<compile_context>
chip_gen: v5e
topology: v5e:2x2
jax: 0.10.0
libtpu: 0.0.40
codegen_flags: <defaults>
</compile_context>

<pallas_src>
import jax
import jax.numpy as jnp
from jax.experimental import pallas as pl
from jax.experimental.pallas import tpu as pltpu

NBIT_W = 8            # quantized_weight[1]
NBIT_IN = 8           # quantized_input[1]
FACO = 28.274334
QUANT_LEVEL = 1       # Quantized_activation_level
N_HIDDEN = 64
LANES = 128           # lane-dense padded width for kernel outputs / weight RHS


def _quantize_to_bit(x, nbit):
    # mirror of quantize_to_bit_ (torch.round == round-half-to-even == jnp.round)
    x = (1.0 - 2.0 ** (1 - nbit)) * x
    x = jnp.clip(x, -1.0, 1.0)
    return jnp.round(x / (2.0 ** (1 - nbit)))


def prepare_params(w1, b1, w2, b2):
    """One-time weight prep hoisted out of the per-call kernel:
    8-bit quantization, effective fc1 bias, spike threshold, transpose + 128-lane pad."""
    w1 = w1.astype(jnp.float32)
    b1 = b1.reshape(1, -1).astype(jnp.float32)
    w2 = w2.astype(jnp.float32)
    b2 = b2.reshape(1, -1).astype(jnp.float32)
    n_states = w1.shape[1]
    n_actions = w2.shape[0]

    # fc1 weight/bias quantization (scale_factor[0] := factor1, cached like the reference)
    factor1 = jnp.maximum(jnp.max(jnp.abs(w1)), jnp.max(jnp.abs(b1)))
    w1_q = _quantize_to_bit(w1 / factor1, NBIT_W)
    b1_q = _quantize_to_bit(b1 / factor1, NBIT_W)

    # fc2 weight/bias quantization
    factor2 = jnp.maximum(jnp.max(jnp.abs(w2)), jnp.max(jnp.abs(b2)))
    w2_q = _quantize_to_bit(w2 / factor2, NBIT_W)
    b2_q = _quantize_to_bit(b2 / factor2, NBIT_W)

    # effective fc1 bias used in F.linear: 2^(nbit_in-1) * b1_q / faco
    b1_eff = (2.0 ** (NBIT_IN - 1)) * b1_q / FACO

    # spike threshold (both quantization branches applied, as in the reference)
    thr = 0.999
    thr = (2.0 ** (NBIT_W - 1)) * (1.0 - 2.0 ** (1 - NBIT_W)) * thr / factor1
    thr = (2.0 ** (NBIT_IN - 1)) * (1.0 - 2.0 ** (1 - NBIT_IN)) * thr / FACO

    # pre-transpose to (in, out) and pad the output dim to 128 lanes (zeros elsewhere)
    w1t = jnp.zeros((n_states, LANES), jnp.float32).at[:, :N_HIDDEN].set(w1_q.T)
    b1p = jnp.zeros((1, LANES), jnp.float32).at[:, :N_HIDDEN].set(b1_eff)
    w2t = jnp.zeros((LANES, LANES), jnp.float32).at[:N_HIDDEN, :n_actions].set(w2_q.T)
    b2p = jnp.zeros((1, LANES), jnp.float32).at[:, :n_actions].set(b2_q)

    return {
        "w1t": w1t,                               # (n_states, 128) f32
        "b1p": b1p,                               # (1, 128) f32
        "w2t": w2t.astype(jnp.bfloat16),          # quantized ints |v|<=127: exact in bf16
        "b2p": b2p,                               # (1, 128) f32
        "thr": thr.astype(jnp.float32).reshape(1, 1),
        "n_actions": int(n_actions),
    }


def net_kernel(thr_ref, x_ref, w1t_ref, b1_ref, w2t_ref, b2_ref,
               outs_ref, spikes_ref):
    x = x_ref[...]            # (B, n_states)   f32
    w1t = w1t_ref[...]        # (n_states, 128) f32  pre-quantized / transposed / padded
    b1 = b1_ref[...]          # (1, 128)        f32  pre-scaled effective fc1 bias
    thr = thr_ref[0, 0]       # spike threshold scalar (SMEM)

    # per-call input 8-bit quantization
    xq = _quantize_to_bit(x / FACO, NBIT_IN)          # (B, n_states)

    # fc1 on the VPU: K (= n_states) is tiny, an unrolled broadcast-FMA chain
    # avoids the MXU push / result-FIFO latency entirely.
    n_states = x.shape[1]
    h = xq[:, 0:1] * w1t[0:1, :]                      # (B, 128)
    for k in range(1, n_states):
        h = h + xq[:, k:k + 1] * w1t[k:k + 1, :]
    h = h + b1

    # single-timestep spike thresholding (Quantized_activation_level == 1).
    # Padded lanes have h == 0 < thr, so they stay 0.
    # TODO(synk): QUANT_LEVEL > 1 would need SLAYER reset-by-subtraction dynamics.
    spikes = jnp.where(h >= thr, 1.0, 0.0)            # (B, 128) f32
    spikes_ref[...] = spikes

    # fc2 applied to batch row 0 only (reference uses out_[0][0]); bf16 MXU, f32 acc.
    s0 = spikes[0:1, :].astype(jnp.bfloat16)          # (1, 128)
    out_s = jnp.dot(s0, w2t_ref[...], preferred_element_type=jnp.float32)
    outs_ref[...] = out_s + b2_ref[...]               # (1, 128) lane-dense store


def net_forward(x, params):
    """Returns (out_s [1, n_actions], out_hdc [B, 64, QUANT_LEVEL])."""
    B = x.shape[0]
    n_actions = params["n_actions"]
    vmem = pl.BlockSpec(memory_space=pltpu.MemorySpace.VMEM)
    smem = pl.BlockSpec(memory_space=pltpu.MemorySpace.SMEM)
    out_s_pad, spikes_pad = pl.pallas_call(
        net_kernel,
        out_shape=(
            jax.ShapeDtypeStruct((1, LANES), jnp.float32),
            jax.ShapeDtypeStruct((B, LANES), jnp.float32),
        ),
        in_specs=[smem, vmem, vmem, vmem, vmem, vmem],
        out_specs=(vmem, vmem),
    )(params["thr"], x.astype(jnp.float32), params["w1t"], params["b1p"],
      params["w2t"], params["b2p"])
    out_s = out_s_pad[:, :n_actions]
    # out_hdc matches torch.stack(spikes_data, dim=-1) -> (B, 64, 1) binary spikes
    out_hdc = spikes_pad[:, :N_HIDDEN].reshape(B, N_HIDDEN, QUANT_LEVEL)
    return out_s, out_hdc


if __name__ == "__main__":
    key = jax.random.PRNGKey(0)
    n_states, n_actions, batch = 6, 3, 2   # Acrobot-v1: 6 states, 3 actions
    k1, k2, k3, k4, k5 = jax.random.split(key, 5)

    # fc1 / fc2: weight ~ N(0, 0.1) (as in __init__), bias ~ U(-1/sqrt(fan_in), 1/sqrt(fan_in))
    w1 = 0.1 * jax.random.normal(k1, (N_HIDDEN, n_states), dtype=jnp.float32)
    b1 = ((jax.random.uniform(k2, (N_HIDDEN,), dtype=jnp.float32) * 2.0 - 1.0)
          / jnp.sqrt(jnp.float32(n_states)))
    w2 = 0.1 * jax.random.normal(k3, (n_actions, N_HIDDEN), dtype=jnp.float32)
    b2 = ((jax.random.uniform(k4, (n_actions,), dtype=jnp.float32) * 2.0 - 1.0)
          / jnp.sqrt(jnp.float32(N_HIDDEN)))

    x = jax.random.normal(k5, (batch, n_states), dtype=jnp.float32)

    params = prepare_params(w1, b1, w2, b2)   # one-time prep, reused across calls
    out_s, out_hdc = net_forward(x, params)
    jax.block_until_ready((out_s, out_hdc))
    assert out_s.shape == (1, n_actions)
    assert out_hdc.shape == (batch, N_HIDDEN, QUANT_LEVEL)
    print("KERNEL_OK")
</pallas_src>

<mosaic_0001>
module attributes {stable_mosaic.version = 11 : i64} {
  func.func @net_kernel(%arg0: memref<1x1xf32, #tpu.memory_space<smem>>, %arg1: memref<2x6xf32, #tpu.memory_space<vmem>>, %arg2: memref<6x128xf32, #tpu.memory_space<vmem>>, %arg3: memref<1x128xf32, #tpu.memory_space<vmem>>, %arg4: memref<128x128xbf16, #tpu.memory_space<vmem>>, %arg5: memref<1x128xf32, #tpu.memory_space<vmem>>, %arg6: memref<1x128xf32, #tpu.memory_space<vmem>>, %arg7: memref<2x128xf32, #tpu.memory_space<vmem>>) attributes {dimension_semantics = [], scalar_prefetch = 0 : i64, scratch_operands = 0 : i64, tpu.core_type = #tpu.core_type<tc>} {
    %c0 = arith.constant 0 : index
    %c0_0 = arith.constant 0 : index
    %0 = vector.load %arg1[%c0, %c0_0] : memref<2x6xf32, #tpu.memory_space<vmem>>, vector<2x6xf32>
    %c0_1 = arith.constant 0 : index
    %c0_2 = arith.constant 0 : index
    %1 = vector.load %arg2[%c0_1, %c0_2] : memref<6x128xf32, #tpu.memory_space<vmem>>, vector<6x128xf32>
    %c0_3 = arith.constant 0 : index
    %c0_4 = arith.constant 0 : index
    %2 = vector.load %arg3[%c0_3, %c0_4] : memref<1x128xf32, #tpu.memory_space<vmem>>, vector<1x128xf32>
    %c0_5 = arith.constant 0 : index
    %c0_6 = arith.constant 0 : index
    %3 = memref.load %arg0[%c0_5, %c0_6] : memref<1x1xf32, #tpu.memory_space<smem>>
    %cst = arith.constant 28.274334 : f32
    %4 = vector.broadcast %cst : f32 to vector<2x6xf32>
    %5 = arith.divf %0, %4 : vector<2x6xf32>
    %cst_7 = arith.constant 0.9921875 : f32
    %6 = vector.broadcast %cst_7 : f32 to vector<2x6xf32>
    %7 = arith.mulf %6, %5 : vector<2x6xf32>
    %cst_8 = arith.constant -1.000000e+00 : f32
    %cst_9 = arith.constant 1.000000e+00 : f32
    %8 = vector.broadcast %cst_8 : f32 to vector<2x6xf32>
    %9 = arith.maximumf %8, %7 : vector<2x6xf32>
    %10 = vector.broadcast %cst_9 : f32 to vector<2x6xf32>
    %11 = arith.minimumf %10, %9 : vector<2x6xf32>
    %cst_10 = arith.constant 7.812500e-03 : f32
    %12 = vector.broadcast %cst_10 : f32 to vector<2x6xf32>
    %13 = arith.divf %11, %12 : vector<2x6xf32>
    %14 = math.roundeven %13 : vector<2x6xf32>
    %15 = vector.extract_strided_slice %14 {offsets = [0, 0], sizes = [2, 1], strides = [1, 1]} : vector<2x6xf32> to vector<2x1xf32>
    %16 = vector.extract_strided_slice %1 {offsets = [0, 0], sizes = [1, 128], strides = [1, 1]} : vector<6x128xf32> to vector<1x128xf32>
    %17 = vector.broadcast %15 : vector<2x1xf32> to vector<2x128xf32>
    %18 = vector.broadcast %16 : vector<1x128xf32> to vector<2x128xf32>
    %19 = arith.mulf %17, %18 : vector<2x128xf32>
    %20 = vector.extract_strided_slice %14 {offsets = [0, 1], sizes = [2, 1], strides = [1, 1]} : vector<2x6xf32> to vector<2x1xf32>
    %21 = vector.extract_strided_slice %1 {offsets = [1, 0], sizes = [1, 128], strides = [1, 1]} : vector<6x128xf32> to vector<1x128xf32>
    %22 = vector.broadcast %20 : vector<2x1xf32> to vector<2x128xf32>
    %23 = vector.broadcast %21 : vector<1x128xf32> to vector<2x128xf32>
    %24 = arith.mulf %22, %23 : vector<2x128xf32>
    %25 = arith.addf %19, %24 : vector<2x128xf32>
    %26 = vector.extract_strided_slice %14 {offsets = [0, 2], sizes = [2, 1], strides = [1, 1]} : vector<2x6xf32> to vector<2x1xf32>
    %27 = vector.extract_strided_slice %1 {offsets = [2, 0], sizes = [1, 128], strides = [1, 1]} : vector<6x128xf32> to vector<1x128xf32>
    %28 = vector.broadcast %26 : vector<2x1xf32> to vector<2x128xf32>
    %29 = vector.broadcast %27 : vector<1x128xf32> to vector<2x128xf32>
    %30 = arith.mulf %28, %29 : vector<2x128xf32>
    %31 = arith.addf %25, %30 : vector<2x128xf32>
    %32 = vector.extract_strided_slice %14 {offsets = [0, 3], sizes = [2, 1], strides = [1, 1]} : vector<2x6xf32> to vector<2x1xf32>
    %33 = vector.extract_strided_slice %1 {offsets = [3, 0], sizes = [1, 128], strides = [1, 1]} : vector<6x128xf32> to vector<1x128xf32>
    %34 = vector.broadcast %32 : vector<2x1xf32> to vector<2x128xf32>
    %35 = vector.broadcast %33 : vector<1x128xf32> to vector<2x128xf32>
    %36 = arith.mulf %34, %35 : vector<2x128xf32>
    %37 = arith.addf %31, %36 : vector<2x128xf32>
    %38 = vector.extract_strided_slice %14 {offsets = [0, 4], sizes = [2, 1], strides = [1, 1]} : vector<2x6xf32> to vector<2x1xf32>
    %39 = vector.extract_strided_slice %1 {offsets = [4, 0], sizes = [1, 128], strides = [1, 1]} : vector<6x128xf32> to vector<1x128xf32>
    %40 = vector.broadcast %38 : vector<2x1xf32> to vector<2x128xf32>
    %41 = vector.broadcast %39 : vector<1x128xf32> to vector<2x128xf32>
    %42 = arith.mulf %40, %41 : vector<2x128xf32>
    %43 = arith.addf %37, %42 : vector<2x128xf32>
    %44 = vector.extract_strided_slice %14 {offsets = [0, 5], sizes = [2, 1], strides = [1, 1]} : vector<2x6xf32> to vector<2x1xf32>
    %45 = vector.extract_strided_slice %1 {offsets = [5, 0], sizes = [1, 128], strides = [1, 1]} : vector<6x128xf32> to vector<1x128xf32>
    %46 = vector.broadcast %44 : vector<2x1xf32> to vector<2x128xf32>
    %47 = vector.broadcast %45 : vector<1x128xf32> to vector<2x128xf32>
    %48 = arith.mulf %46, %47 : vector<2x128xf32>
    %49 = arith.addf %43, %48 : vector<2x128xf32>
    %50 = vector.broadcast %2 : vector<1x128xf32> to vector<2x128xf32>
    %51 = arith.addf %49, %50 : vector<2x128xf32>
    %52 = vector.broadcast %3 : f32 to vector<2x128xf32>
    %53 = arith.cmpf oge, %51, %52 : vector<2x128xf32>
    %cst_11 = arith.constant 1.000000e+00 : f32
    %cst_12 = arith.constant 0.000000e+00 : f32
    %54 = vector.broadcast %cst_11 : f32 to vector<2x128xf32>
    %55 = vector.broadcast %cst_12 : f32 to vector<2x128xf32>
    %56 = arith.select %53, %54, %55 : vector<2x128xi1>, vector<2x128xf32>
    %c0_13 = arith.constant 0 : index
    %c0_14 = arith.constant 0 : index
    %57 = vector.load %arg7[%c0_13, %c0_14] : memref<2x128xf32, #tpu.memory_space<vmem>>, vector<2x128xf32>
    tpu.vector_store %arg7[%c0_13, %c0_14], %56 {strides = array<i32>} : memref<2x128xf32, #tpu.memory_space<vmem>>, vector<2x128xf32>,
    %58 = vector.extract_strided_slice %56 {offsets = [0, 0], sizes = [1, 128], strides = [1, 1]} : vector<2x128xf32> to vector<1x128xf32>
    %59 = arith.truncf %58 : vector<1x128xf32> to vector<1x128xbf16>
    %c0_15 = arith.constant 0 : index
    %c0_16 = arith.constant 0 : index
    %60 = vector.load %arg4[%c0_15, %c0_16] : memref<128x128xbf16, #tpu.memory_space<vmem>>, vector<128x128xbf16>
    %cst_17 = arith.constant dense<0.000000e+00> : vector<1x128xf32>
    %61 = tpu.matmul %59, %60, %cst_17 {dimension_numbers = #tpu.dot_dimension_numbers<[1], [0], [0], [1], [0, 0, 1, 1], [], []>} : vector<1x128xbf16>, vector<128x128xbf16>, vector<1x128xf32> -> vector<1x128xf32>
    %c0_18 = arith.constant 0 : index
    %c0_19 = arith.constant 0 : index
    %62 = vector.load %arg5[%c0_18, %c0_19] : memref<1x128xf32, #tpu.memory_space<vmem>>, vector<1x128xf32>
    %63 = arith.addf %61, %62 : vector<1x128xf32>
    %c0_20 = arith.constant 0 : index
    %c0_21 = arith.constant 0 : index
    %64 = vector.load %arg6[%c0_20, %c0_21] : memref<1x128xf32, #tpu.memory_space<vmem>>, vector<1x128xf32>
    tpu.vector_store %arg6[%c0_20, %c0_21], %63 {strides = array<i32>} : memref<1x128xf32, #tpu.memory_space<vmem>>, vector<1x128xf32>,
    return
  }
}

</mosaic_0001>

<bundles_post_ra>
// kernel: tpu_custom_call.1
= control target key start
LH: loop header
LB: loop body
LE: loop exit
PB: predicated region body
PF: predicated region fallthrough
CT: control target
= control target key end

     0   :  { %14 = vsyncpa [#allocation4], 0  ;;  %s509_s0 = inlined_call_operand.<no memory space> [shape: f32[1,1], index: 0, kind: input, shape index: {}]   ;;  %s510_s1 = inlined_call_operand.vmem [shape: f32[2,6], index: 1, kind: input, shape index: {}]   ;;  %s511_s2 = inlined_call_operand.hbm [shape: f32[6,128], index: 2, kind: input, shape index: {}]   ;;  %s512_s3 = inlined_call_operand.vmem [shape: f32[1,128], index: 3, kind: input, shape index: {}]   ;;  %s513_s4 = inlined_call_operand.hbm [shape: bf16[128,128], index: 4, kind: input, shape index: {}]   ;;  %s514_s5 = inlined_call_operand.vmem [shape: f32[1,128], index: 5, kind: input, shape index: {}]   ;;  %s515_s6 = inlined_call_operand.hbm [shape: f32[1,128], index: 6, kind: output, shape index: {0}]   ;;  %s516_s7 = inlined_call_operand.hbm [shape: f32[2,128], index: 7, kind: output, shape index: {1}]  }
   0x1   :  { %15 = vsyncpa [#allocation7], 0 }
   0x2   :  { %16 = vsyncpa [#allocation5], 0 }
   0x3   :  { %17 = vsyncpa [#allocation10], 0  ;;  %s27_s26 = sshll.u32 %s511_s2, 4  ;;  %s429_s27 = smov [#allocation3]   ;;  %s28_s26 = int_to_ptr.hbm [resolvable:$true] %s27_s26 }
   0x4   :  { %s29_s28 = sshll.u32 %s429_s27, 4  ;;  %s39_s8 = sshll.u32 %s513_s4, 4  ;;  %s30_s28 = int_to_ptr.vmem [resolvable:$true] %s29_s28  ;;  %s40_s8 = int_to_ptr.hbm [resolvable:$true] %s39_s8 }
   0x5   :  { %32 = dma.hbm_to_vmem [thread:$0]  %s28_s26, 128, %s30_s28, [#allocation4]  }
   0x6   :  { %s430_s9 = smov [#allocation6]   ;;  %s431_s11 = smov 64  }
   0x7   :  { %s41_s10 = sshll.u32 %s430_s9, 4  ;;  %s432_s12 = smov 4   ;;  %s42_s10 = int_to_ptr.vmem [resolvable:$true] %s41_s10 }
   0x8   :  { %47 = dma.hbm_to_vmem [thread:$0]  %s40_s8, 1024, %s42_s10, [#allocation7], %s431_s11, %s431_s11, %s432_s12  }
   0x9   :  { %421 = dma.done.wait [#allocation4], 128  }
   0xa   :  { %422 = vsyncadd [#allocation4], 4294967168 }
   0xb   :  { %423 = dma.done.wait [#allocation7], 1024  }
   0xc   :  { %424 = vsyncadd [#allocation7], 4294966272  ;;  %v433_v0 = vmov 0   ;;  %v434_v1 = vmov 28.274334   ;;  %v435_v2 = vmov 0.0078125  }
   0xd   :  { %313 = vset.pattern.permute.xlu0 %v433_v0  ;;  %321 = vrcp.f32 %v434_v1  ;;  %v436_v3 = vmov 2   ;;  %v437_v11 = vmov 4   ;;  %v288_v13 = vld [vmem:[#allocation6 + $0x38] sm:$0xff]  ;;  %v287_v16 = vld [vmem:[#allocation6 + $0x30] sm:$0xff]  ;;  %v438_v31 = vmov 1   ;;  %v286_v34 = vld [vmem:[#allocation6 + $0x28] sm:$0xff] }
   0xe   :  { %323 = vrcp.f32 %v435_v2  ;;  %315 = vset.pattern.permute.xlu1 %v436_v3  ;;  %317 = vset.pattern.permute.xlu2 %v437_v11  ;;  %v58_v14 = vld [vmem:[%s510_s1] sm:$0x3]  ;;  %v439_v32 = vmov 3   ;;  %v440_v33 = vmov 5   ;;  %v285_v35 = vld [vmem:[#allocation6 + $0x20] sm:$0xff]  ;;  %v283_v37 = vld [vmem:[#allocation6 + $0x10] sm:$0xff]  ;;  %v128_v1 = vstv %s509_s0 }
   0xf   :  { %198 = vmatpush.bf16.msra.mxu0 %v288_v13  ;;  %v284_v36 = vld [vmem:[#allocation6 + $0x18] sm:$0xff]  ;;  %v282_v38 = vld [vmem:[#allocation6 + $0x8] sm:$0xff]  ;;  %v281_v39 = vld [vmem:[#allocation6] sm:$0xff]  ;;  %v441_v3 = vmov 0.0   ;;  %s443_s16 = smov [#allocation9]   ;;  %s444_s0 = smov [#allocation8]  }
  0x10   :  { %v59_v42 = vld [vmem:[#allocation3] sm:$0x3f]  ;;  %s228_s17 = sshll.u32 %s443_s16, 4  ;;  %s217_s22 = sshll.u32 %s444_s0, 4  ;;  %s229_s17 = int_to_ptr.vmem [resolvable:$true] %s228_s17  ;;  %s218_s22 = int_to_ptr.vmem [resolvable:$true] %s217_s22 }
  0x11   :  { %v87_v44 = vperm.slane %v59_v42, 0  ;;  %v93_v45 = vperm.slane %v59_v42, 1  ;;  %v100_v46 = vperm.slane %v59_v42, 2  ;;  %v107_v47 = vperm.slane %v59_v42, 3  ;;  %v320_v62 = vld [vmem:[%s512_s3] ss:$0 sm:$0xff] }
  0x12   :  { %v114_v52 = vperm.slane %v59_v42, 4  ;;  %v121_v56 = vperm.slane %v59_v42, 5  ;;  %s230_s3 = sshll.u32 %s516_s7, 4  ;;  %s219_s25 = sshll.u32 %s515_s6, 4  ;;  %s231_s3 = int_to_ptr.hbm [resolvable:$true] %s230_s3  ;;  %s220_s25 = int_to_ptr.hbm [resolvable:$true] %s219_s25 }
  0x13   :  { %v322_v4 = vpop.eup %321  ;;  %199 = vmatpush.bf16.msra.mxu0 %v287_v16 }
  0x14   :  { %v324_v5 = vpop.eup %323  ;;  %v63_v6 = vmul.f32 28.274334, %v322_v4  ;;  %vm67_vm0 = vweird.f32 %v322_v4 }
  0x15   :  { %v74_v7 = vmul.f32 0.0078125, %v324_v5  ;;  %vm78_vm1 = vweird.f32 %v324_v5 }
  0x16   :  { %v64_v8 = vsub.f32 1.0, %v63_v6  ;;  %v149_v6 = vld [vmem:[%s514_s5] sm:$0x1] }
  0x17   :  { %v75_v9 = vsub.f32 1.0, %v74_v7  ;;  %200 = vmatpush.bf16.msra.mxu0 %v286_v34 }
  0x18   :  { %v65_v10 = vmul.f32 %v322_v4, %v64_v8 }
  0x19   :  { %v76_v12 = vmul.f32 %v324_v5, %v75_v9 }
  0x1a   :  { %v66_v15 = vadd.f32 %v322_v4, %v65_v10 }
  0x1b   :  { %v77_v18 = vadd.f32 %v324_v5, %v76_v12  ;;  %201 = vmatpush.bf16.msra.mxu0 %v285_v35 }
  0x1c   :  { %v68_v17 = vsel %vm67_vm0, %v322_v4, %v66_v15 }
  0x1d   :  { %v69_v19 = vmul.f32 %v68_v17, %v58_v14  ;;  %v79_v21 = vsel %vm78_vm1, %v324_v5, %v77_v18  ;;  %v442_v5 = vmov 1.0|1.0  }
  0x1f   :  { %v70_v20 = vmul.f32 0.9921875, %v69_v19  ;;  %202 = vmatpush.bf16.msra.mxu0 %v284_v36 }
  0x21   :  { %v246_v22 = vclamps-f32 %v70_v20, 1.0 }
  0x23   :  { %v80_v23 = vmul.f32 %v246_v22, %v79_v21  ;;  %203 = vmatpush.bf16.msra.mxu0 %v283_v37 }
  0x25   :  { %v291_v24 = vcvt.f32.s32 %v80_v23  ;;  %v289_v25 = vand.u32 2147483647, %v80_v23  ;;  %v294_v27 = vand.u32 2147483648, %v80_v23 }
  0x27   :  { %v292_v26 = vcvt.s32.f32 %v291_v24  ;;  %vm290_vm2 = vcmp.lt.f32.partialorder %v289_v25, 8388608.0  ;;  %204 = vmatpush.bf16.msra.mxu0 %v282_v38 }
  0x29   :  { %v293_v28 = vand.u32 2147483647, %v292_v26 }
  0x2b   :  { %v295_v29 = vor.u32 %v294_v27, %v293_v28  ;;  %205 = vmatpush.bf16.msra.mxu0 %v281_v39 }
  0x2d   :  { %v296_v30 = vsel %vm290_vm2, %v295_v29, %v80_v23 }
  0x2e   :  { %84 = vperm.xlu0 %313, %v296_v30   ;;  %97 = vperm.xlu1 %315, %v296_v30  }
  0x2f   :  { %111 = vperm.xlu2 %317, %v296_v30  }
  0x36   :  { %314 = vset.pattern.permute.xlu0 %v438_v31  ;;  %316 = vset.pattern.permute.xlu1 %v439_v32 }
  0x37   :  { %90 = vperm.xlu0 %314, %v296_v30   ;;  %104 = vperm.xlu1 %316, %v296_v30  }
  0x38   :  { %318 = vset.pattern.permute.xlu2 %v440_v33 }
  0x39   :  { %118 = vperm.xlu2 %318, %v296_v30  }
  0x3f   :  { %319 = vset.pattern.permute.xlu0 %v440_v33 }
  0x89   :  { %v112_v43 = vpop.permute.xlu2 %111 }
  0x8a   :  { %v115_v59 = vmul.f32 %v114_v52, %v112_v43 }
  0x93   :  { %v119_v57 = vpop.permute.xlu2 %118 }
  0x94   :  { %v122_v61 = vmul.f32 %v121_v56, %v119_v57 }
  0xa0   :  { %v85_v40 = vpop.permute.xlu0 %84  ;;  %v98_v41 = vpop.permute.xlu1 %97 }
  0xa1   :  { %v88_v50 = vmul.f32 %v87_v44, %v85_v40  ;;  %v101_v53 = vmul.f32 %v100_v46, %v98_v41 }
  0xa9   :  { %v91_v48 = vpop.permute.xlu0 %90  ;;  %v105_v49 = vpop.permute.xlu1 %104 }
  0xaa   :  { %v94_v51 = vmul.f32 %v93_v45, %v91_v48  ;;  %v108_v55 = vmul.f32 %v107_v47, %v105_v49 }
  0xac   :  { %v95_v54 = vadd.f32 %v94_v51, %v88_v50 }
  0xae   :  { %v102_v58 = vadd.f32 %v101_v53, %v95_v54 }
  0xb0   :  { %v109_v60 = vadd.f32 %v108_v55, %v102_v58 }
  0xb2   :  { %v116_v63 = vadd.f32 %v115_v59, %v109_v60 }
  0xb4   :  { %v123_v0 = vadd.f32 %v122_v61, %v116_v63 }
  0xb6   :  { %v127_v2 = vadd.f32 %v320_v62, %v123_v0 }
  0xb8   :  { %vm129_vm3 = vcmp.ge.f32.partialorder %v127_v2, %v128_v1 }
  0xb9   :  { %v130_v4 = vsel %vm129_vm3, 1.0, %v441_v3  ;;  %vm279_vm4 = vmpackc.low %vm129_vm3, %vm129_vm3 }
  0xba   :  { %280 = vmatmul.msk.bf16.vlgmr.msra.gmra.mxu0 %vm279_vm4, %v442_v5  ;;  %131 = vst [vmem:[#allocation9] sm:$0x3] %v130_v4 }
  0xbb   :  { %233 = dma.vmem_to_hbm [thread:$0]  %s229_s17, 32, %s231_s3, [#allocation10]  }
 0x137   :  { %v207_v7 = vpop.f32.mrf.mxu0 }
 0x138   :  { %v208_v8 = vadd.f32 %v207_v7, %v149_v6 }
 0x13a   :  { %211 = vst [vmem:[#allocation8] sm:$0x1] %v208_v8 }
 0x13b   :  { %222 = dma.vmem_to_hbm [thread:$0]  %s218_s22, 16, %s220_s25, [#allocation5]  }
 0x13f   :  { %v209_v9 = vpop.f32.mrf.mxu0 }
 0x140   :  { %425 = dma.done.wait [#allocation5], 16  }
 0x141   :  { %426 = vsyncadd [#allocation5], 4294967280 }
 0x142   :  { %427 = dma.done.wait [#allocation10], 32  }
 0x143   :  { %428 = vsyncadd [#allocation10], 4294967264 }
 0x144   :  { %242 = vsyncpa [#allocation4], 1 }
 0x145   :  { %243 = vsyncpa [#allocation7], 1 }
 0x146   :  { %244 = vsyncpa [#allocation5], 1 }
 0x147   :  { %245 = vsyncpa [#allocation10], 1 }

</bundles_post_ra>
